<compile_context>
chip_gen: v5e
topology: v5e:2x2
jax: 0.10.0
libtpu: 0.0.40
codegen_flags: <defaults>
</compile_context>

<pallas_src>
import functools

import jax
import jax.numpy as jnp
from jax.experimental import pallas as pl
from jax.experimental.pallas import tpu as pltpu

_LANE = 128


# --------------------------------------------------------------------------- #
# In-kernel helpers                                                            #
# --------------------------------------------------------------------------- #
def _lane_partials(x_ref, w_ref, valid_cols=None):
    """Per-lane partial sums of x * w over the feature (lane) dimension.

    x_ref: (tm, tk) VMEM ref      w_ref: (1, tk) VMEM ref
    valid_cols: optional (1, tk) bool -- columns beyond the true feature dim are
        zeroed (used by the K-tiled path when tk does not divide D, so garbage
        from the out-of-bounds last K block never reaches the sum).

    Returns a (tm, 128) f32 value whose lane l holds the sum over feature columns
    congruent to l mod 128 (plus, folded into lane 0, the (tk % 128)-wide tail).
    All multiply/add work is VPU; there is no MXU use and no wide XLU reduce here.
    """
    tm, tk = x_ref.shape
    ngrp, rem = divmod(tk, _LANE)

    def _mask(term, lo, width):
        if valid_cols is None:
            return term
        return jnp.where(valid_cols[:, lo:lo + width], term, 0.0)

    part = None
    for g in range(ngrp):
        lo = g * _LANE
        term = (x_ref[:, lo:lo + _LANE].astype(jnp.float32)
                * w_ref[:, lo:lo + _LANE].astype(jnp.float32))
        term = _mask(term, lo, _LANE)
        part = term if part is None else part + term

    if rem:
        lo = ngrp * _LANE
        tail = (x_ref[:, lo:lo + rem].astype(jnp.float32)
                * w_ref[:, lo:lo + rem].astype(jnp.float32))
        tail = _mask(tail, lo, rem)
        tail = jnp.sum(tail, axis=-1, keepdims=True)                # (tm, 1)
        lane0 = jax.lax.broadcasted_iota(jnp.int32, (tm, _LANE), 1) == 0
        fold = jnp.where(lane0, tail, 0.0)                          # (tm, 128)
        part = fold if part is None else part + fold

    return part


def _fold_to_row(part):
    """(tm, 128) lane-partials -> lane-dense (1, tm) row of per-example sums.

    Four XLU rolls fold the 128 lanes into 8 residue-class sums (every lane j ends
    up holding the sum of its class j mod 8); the final contraction with a (1, 8)
    ones vector runs on the MXU with a tiny (8, tm) stationary operand (~tm/16
    weight-push cycles, once per batch tile) and yields the (1, tm) row directly.
    """
    p = part
    for shift in (64, 32, 16, 8):
        p = p + pltpu.roll(p, shift=shift, axis=1)
    p8 = p[:, :8]                                                   # (tm, 8)
    ones = jnp.ones((1, 8), dtype=jnp.float32)
    return jax.lax.dot_general(
        ones, p8, dimension_numbers=(((1,), (1,)), ((), ())),
        preferred_element_type=jnp.float32)                         # (1, tm)


# --------------------------------------------------------------------------- #
# Kernels                                                                      #
# --------------------------------------------------------------------------- #
def _perceptron_kernel_single(x_ref, w_ref, b_ref, o_ref):
    """nk == 1: whole feature dim in one block; no scratch, no predication.

    x_ref: (tm, D) VMEM   w_ref: (1, D) VMEM   b_ref: (1, 1) SMEM
    o_ref: (1, 1, tm) VMEM  (lane-dense output row for this batch tile)
    """
    part = _lane_partials(x_ref, w_ref)
    row = _fold_to_row(part) + b_ref[0, 0]
    o_ref[0] = row.astype(o_ref.dtype)


def _perceptron_kernel_ktiled(x_ref, w_ref, b_ref, o_ref, acc_ref, *, d_total):
    """nk > 1 (very large D): resident (tm, 128) accumulator across the K axis."""
    k = pl.program_id(1)
    nk = pl.num_programs(1)
    tk = x_ref.shape[1]

    @pl.when(k == 0)
    def _init():
        acc_ref[...] = jnp.zeros_like(acc_ref)

    if d_total % tk != 0:
        # Ragged last K block: mask its out-of-range columns in-kernel instead of
        # materialising a zero-padded copy of x in HBM (3x traffic when hit).
        cols = k * tk + jax.lax.broadcasted_iota(jnp.int32, (1, tk), 1)
        valid = cols < d_total
    else:
        valid = None

    acc_ref[...] += _lane_partials(x_ref, w_ref, valid)

    @pl.when(k == nk - 1)
    def _finalize():
        row = _fold_to_row(acc_ref[...]) + b_ref[0, 0]
        o_ref[0] = row.astype(o_ref.dtype)


# --------------------------------------------------------------------------- #
# Wrapper                                                                      #
# --------------------------------------------------------------------------- #
def _round_up(x, m):
    return -(-x // m) * m


def _vmem_caps():
    try:
        cap = int(pltpu.get_tpu_info().vmem_capacity_bytes)
    except Exception:
        cap = 64 << 20            # v7x physical VMEM -- most conservative case
    # Working-set budget for tile selection: leave ~half of physical VMEM free.
    budget = max(16 << 20, min(cap // 2, 56 << 20))
    return cap, budget


def perceptron_forward(x, weight, bias, *, d_single_max=8192, tm_max=8192):
    """y = x @ weight.T + bias   (PyTorch nn.Linear(input_dim, 1) forward)."""
    B, D = x.shape
    out_dtype = x.dtype

    cap, budget = _vmem_caps()

    # ---- feature (K) tiling: prefer nk == 1 (weight row fully resident) -------
    if D <= d_single_max:
        tk, nk = D, 1
    else:
        tk = d_single_max - d_single_max % _LANE
        for cand in range(tk, _LANE - 1, -_LANE):   # multiple of 128 dividing D
            if D % cand == 0:
                tk = cand
                break
        nk = pl.cdiv(D, tk)

    # ---- batch (M) tiling: biggest tile that fits the VMEM budget -------------
    # per-row bytes ~ double-buffered x block (8*tk) + lane-partials / rolls /
    # accumulator (~4 * 128 * 4) + double-buffered output row (8).
    per_row = 8 * tk + 4 * _LANE * 4 + 8
    tm = max(8, min(tm_max, budget // per_row, _round_up(B, 8)))
    tm -= tm % 8
    # Megacore: ensure >= 2 batch tiles for mid/large batches so both v7x
    # TensorCores get work (free on single-TC v5e/v6e).
    if B >= 64 and pl.cdiv(B, tm) < 2:
        tm = _round_up(pl.cdiv(B, 2), 8)
    nm = pl.cdiv(B, tm)

    b2d = bias.reshape(1, 1).astype(jnp.float32)

    # Scoped-VMEM limit: actual footprint + 25% margin, within physical capacity
    # (no fixed 48 MiB clamp; bigger tiles on v6e, headroom respected on v7x).
    footprint = (2 * tm * tk * 4 + 2 * 8 * tk * 4 + 2 * tm * 4
                 + (5 if nk > 1 else 4) * tm * _LANE * 4)
    vmem_limit = int(min(max(32 << 20, footprint * 5 // 4), cap - (8 << 20)))

    if nk == 1:
        grid_spec = pltpu.PrefetchScalarGridSpec(
            num_scalar_prefetch=0,
            grid=(nm,),
            in_specs=[
                pl.BlockSpec((tm, tk), lambda i: (i, 0)),            # x tile
                pl.BlockSpec((1, tk), lambda i: (0, 0)),             # weight row
                pl.BlockSpec(memory_space=pltpu.MemorySpace.SMEM),   # bias
            ],
            out_specs=pl.BlockSpec((1, 1, tm), lambda i: (i, 0, 0)),
        )
        kernel = _perceptron_kernel_single
        dim_sem = ("parallel",)
    else:
        grid_spec = pltpu.PrefetchScalarGridSpec(
            num_scalar_prefetch=0,
            grid=(nm, nk),                                           # reduction last
            in_specs=[
                pl.BlockSpec((tm, tk), lambda i, k: (i, k)),
                pl.BlockSpec((1, tk), lambda i, k: (0, k)),
                pl.BlockSpec(memory_space=pltpu.MemorySpace.SMEM),
            ],
            out_specs=pl.BlockSpec((1, 1, tm), lambda i, k: (i, 0, 0)),
            scratch_shapes=[pltpu.VMEM((tm, _LANE), jnp.float32)],
        )
        kernel = functools.partial(_perceptron_kernel_ktiled, d_total=D)
        dim_sem = ("parallel", "arbitrary")

    out_rows = pl.pallas_call(
        kernel,
        out_shape=jax.ShapeDtypeStruct((nm, 1, tm), out_dtype),
        grid_spec=grid_spec,
        compiler_params=pltpu.CompilerParams(
            dimension_semantics=dim_sem,
            vmem_limit_bytes=vmem_limit,
        ),
    )(x, weight, b2d)

    # (nm, 1, tm) lane-dense rows -> (B, 1); rows from the clipped last batch tile
    # hold garbage (out-of-bounds input rows) and are sliced away here.
    return out_rows.reshape(nm * tm, 1)[:B]


# --------------------------------------------------------------------------- #
# Self-test                                                                    #
# --------------------------------------------------------------------------- #
if __name__ == "__main__":
    key = jax.random.PRNGKey(0)
    k_x, k_w, k_b, k_x2, k_x3 = jax.random.split(key, 5)

    def ref_fn(x, w, b):
        return jnp.sum(x * w, axis=-1, keepdims=True) + b[0]

    # 1) Small shapes matching the module (batch of feature vectors):
    #    nk == 1 kernel, D < 128 (tail-only lane fold), single batch tile.
    batch, input_dim = 8, 32
    x = jax.random.normal(k_x, (batch, input_dim), dtype=jnp.float32)
    bound = 1.0 / float(input_dim) ** 0.5
    w = jax.random.uniform(k_w, (1, input_dim), jnp.float32, -bound, bound)
    b = jax.random.uniform(k_b, (1,), jnp.float32, -bound, bound)
    out = jax.block_until_ready(perceptron_forward(x, w, b))
    assert out.shape == (batch, 1)
    assert jnp.allclose(out, ref_fn(x, w, b), atol=1e-5, rtol=1e-5)

    # 2) Mid-size: nk == 1, three full lane groups, megacore split (nm == 2) and
    #    a clipped last batch tile whose padded rows are sliced away.
    B2, D2 = 1000, 384
    x2 = jax.random.normal(k_x2, (B2, D2), dtype=jnp.float32)
    bound2 = 1.0 / float(D2) ** 0.5
    w2 = jax.random.uniform(k_w, (1, D2), jnp.float32, -bound2, bound2)
    b2 = jax.random.uniform(k_b, (1,), jnp.float32, -bound2, bound2)
    out2 = jax.block_until_ready(perceptron_forward(x2, w2, b2))
    assert out2.shape == (B2, 1)
    assert jnp.allclose(out2, ref_fn(x2, w2, b2), atol=1e-4, rtol=1e-4)

    # 3) Force the K-tiled kernel (the path used for very large D) on small data:
    #    grid (nm=2, nk=3) with a masked ragged last K block (300 % 128 != 0).
    B3, D3 = 96, 300
    x3 = jax.random.normal(k_x3, (B3, D3), dtype=jnp.float32)
    bound3 = 1.0 / float(D3) ** 0.5
    w3 = jax.random.uniform(k_w, (1, D3), jnp.float32, -bound3, bound3)
    b3 = jax.random.uniform(k_b, (1,), jnp.float32, -bound3, bound3)
    out3 = jax.block_until_ready(perceptron_forward(x3, w3, b3, d_single_max=128))
    assert out3.shape == (B3, 1)
    assert jnp.allclose(out3, ref_fn(x3, w3, b3), atol=1e-4, rtol=1e-4)

    print("KERNEL_OK")
</pallas_src>

<mosaic_0001>
module attributes {stable_mosaic.version = 11 : i64} {
  func.func @_perceptron_kernel_single(%arg0: i32, %arg1: memref<8x32xf32, #tpu.memory_space<vmem>>, %arg2: memref<1x32xf32, #tpu.memory_space<vmem>>, %arg3: memref<1x1xf32, #tpu.memory_space<smem>>, %arg4: memref<1x1x8xf32, #tpu.memory_space<vmem>>) attributes {dimension_semantics = [#tpu.dimension_semantics<parallel>], iteration_bounds = array<i64: 1>, scalar_prefetch = 0 : i64, scratch_operands = 0 : i64, tpu.core_type = #tpu.core_type<tc>, window_params = [{transform_indices = @transform_0, window_bounds = array<i64: 8, 32>}, {pipeline_mode = #tpu.pipeline_mode<synchronous>, transform_indices = @transform_1, window_bounds = array<i64: 1, 32>}, {transform_indices = @transform_2, window_bounds = array<i64: 1, 1>}, {transform_indices = @transform_3, window_bounds = array<i64: 1, 1, 8>}]} {
    %c0 = arith.constant 0 : index
    %c0_0 = arith.constant 0 : index
    %0 = vector.load %arg1[%c0, %c0_0] : memref<8x32xf32, #tpu.memory_space<vmem>>, vector<8x32xf32>
    %c0_1 = arith.constant 0 : index
    %c0_2 = arith.constant 0 : index
    %1 = vector.load %arg2[%c0_1, %c0_2] : memref<1x32xf32, #tpu.memory_space<vmem>>, vector<1x32xf32>
    %2 = vector.broadcast %1 : vector<1x32xf32> to vector<8x32xf32>
    %3 = arith.mulf %0, %2 : vector<8x32xf32>
    %cst = arith.constant dense<0.000000e+00> : vector<8xf32>
    %4 = vector.multi_reduction <add>, %3, %cst [1] : vector<8x32xf32> to vector<8xf32>
    %5 = vector.shape_cast %4 : vector<8xf32> to vector<8x1xf32>
    %6 = tpu.iota {dimensions = array<i32: 1>} : vector<8x128xi32>
    %c0_i32 = arith.constant 0 : i32
    %7 = vector.broadcast %c0_i32 : i32 to vector<8x128xi32>
    %8 = arith.cmpi eq, %6, %7 : vector<8x128xi32>
    %cst_3 = arith.constant 0.000000e+00 : f32
    %9 = vector.shape_cast %5 : vector<8x1xf32> to vector<8x1xf32>
    %10 = vector.broadcast %9 : vector<8x1xf32> to vector<8x128xf32>
    %11 = vector.broadcast %cst_3 : f32 to vector<8x128xf32>
    %12 = arith.select %8, %10, %11 : vector<8x128xi1>, vector<8x128xf32>
    %c64_i32 = arith.constant 64 : i32
    %13 = tpu.dynamic_rotate %12 by %c64_i32 dim 1 : vector<8x128xf32>, i32 -> vector<8x128xf32>
    %14 = arith.addf %12, %13 : vector<8x128xf32>
    %c32_i32 = arith.constant 32 : i32
    %15 = tpu.dynamic_rotate %14 by %c32_i32 dim 1 : vector<8x128xf32>, i32 -> vector<8x128xf32>
    %16 = arith.addf %14, %15 : vector<8x128xf32>
    %c16_i32 = arith.constant 16 : i32
    %17 = tpu.dynamic_rotate %16 by %c16_i32 dim 1 : vector<8x128xf32>, i32 -> vector<8x128xf32>
    %18 = arith.addf %16, %17 : vector<8x128xf32>
    %c8_i32 = arith.constant 8 : i32
    %19 = tpu.dynamic_rotate %18 by %c8_i32 dim 1 : vector<8x128xf32>, i32 -> vector<8x128xf32>
    %20 = arith.addf %18, %19 : vector<8x128xf32>
    %21 = vector.extract_strided_slice %20 {offsets = [0, 0], sizes = [8, 8], strides = [1, 1]} : vector<8x128xf32> to vector<8x8xf32>
    %cst_4 = arith.constant 1.000000e+00 : f32
    %22 = vector.broadcast %cst_4 : f32 to vector<1x8xf32>
    %cst_5 = arith.constant dense<0.000000e+00> : vector<1x8xf32>
    %23 = tpu.matmul %22, %21, %cst_5 {dimension_numbers = #tpu.dot_dimension_numbers<[1], [1], [0], [0], [0, 0, 1, 0], [], []>} : vector<1x8xf32>, vector<8x8xf32>, vector<1x8xf32> -> vector<1x8xf32>
    %c0_6 = arith.constant 0 : index
    %c0_7 = arith.constant 0 : index
    %24 = memref.load %arg3[%c0_6, %c0_7] : memref<1x1xf32, #tpu.memory_space<smem>>
    %25 = vector.broadcast %24 : f32 to vector<1x8xf32>
    %26 = arith.addf %23, %25 : vector<1x8xf32>
    %c0_8 = arith.constant 0 : index
    %c0_9 = arith.constant 0 : index
    %c0_10 = arith.constant 0 : index
    %27 = vector.load %arg4[%c0_8, %c0_9, %c0_10] : memref<1x1x8xf32, #tpu.memory_space<vmem>>, vector<1x1x8xf32>
    %28 = vector.shape_cast %27 : vector<1x1x8xf32> to vector<1x8xf32>
    %29 = vector.shape_cast %26 : vector<1x8xf32> to vector<1x1x8xf32>
    tpu.vector_store %arg4[%c0_8, %c0_9, %c0_10], %29 {strides = array<i32>} : memref<1x1x8xf32, #tpu.memory_space<vmem>>, vector<1x1x8xf32>,
    return
  }
  func.func @transform_0(%arg0: i32) -> (i32, i32) {
    %c0_i32 = arith.constant 0 : i32
    %c0_i32_0 = arith.constant 0 : i32
    return %arg0, %c0_i32 : i32, i32
  }
  func.func @transform_1(%arg0: i32) -> (i32, i32) {
    %c0_i32 = arith.constant 0 : i32
    %c0_i32_0 = arith.constant 0 : i32
    %c0_i32_1 = arith.constant 0 : i32
    return %c0_i32, %c0_i32_0 : i32, i32
  }
  func.func @transform_2(%arg0: i32) -> (i32, i32) {
    %c0_i32 = arith.constant 0 : i32
    %c0_i32_0 = arith.constant 0 : i32
    %c0_i32_1 = arith.constant 0 : i32
    return %c0_i32, %c0_i32_0 : i32, i32
  }
  func.func @transform_3(%arg0: i32) -> (i32, i32, i32) {
    %c0_i32 = arith.constant 0 : i32
    %c0_i32_0 = arith.constant 0 : i32
    %c0_i32_1 = arith.constant 0 : i32
    return %arg0, %c0_i32, %c0_i32_0 : i32, i32, i32
  }
}

</mosaic_0001>

<bundles_post_ra>
// kernel: tpu_custom_call.1
= control target key start
LH: loop header
LB: loop body
LE: loop exit
PB: predicated region body
PF: predicated region fallthrough
CT: control target
= control target key end

     0   :  { %9 = vsyncpa [#allocation4], 0  ;;  %s205_s0 = inlined_call_operand.hbm [shape: f32[8,32], index: 0, kind: input, shape index: {}]   ;;  %s206_s1 = inlined_call_operand.vmem [shape: f32[1,32], index: 1, kind: input, shape index: {}]   ;;  %s207_s2 = inlined_call_operand.<no memory space> [shape: f32[1,1], index: 2, kind: input, shape index: {}]   ;;  %s208_s3 = inlined_call_operand.hbm [shape: f32[1,1,8], index: 3, kind: output, shape index: {}]  }
   0x1   :  { %10 = vsyncpa [#allocation5], 0  ;;  %s16_s14 = sshll.u32 %s205_s0, 4  ;;  %s166_s15 = smov [#allocation3]   ;;  %s17_s14 = int_to_ptr.hbm [resolvable:$true] %s16_s14 }
   0x2   :  { %s18_s16 = sshll.u32 %s166_s15, 4  ;;  %s19_s16 = int_to_ptr.vmem [resolvable:$true] %s18_s16 }
   0x3   :  { %21 = dma.hbm_to_vmem [thread:$0]  %s17_s14, 128, %s19_s16, [#allocation4]  }
   0x4   :  { %162 = dma.done.wait [#allocation4], 128  }
   0x5   :  { %163 = vsyncadd [#allocation4], 4294967168  ;;  %v30_v0 = vld [vmem:[#allocation3] sm:$0xff]  ;;  %vm36_vm0 = vcmask 261120   ;;  %v40_v4 = vlaneseq  ;;  %s167_s0 = smov 64   ;;  %s168_s19 = smov 32   ;;  %v57_v17 = vstv %s207_s2 }
   0x6   :  { %v113_v1 = vld [vmem:[%s206_s1] ss:$0 sm:$0xff]  ;;  %s169_s20 = smov 16   ;;  %s170_s1 = smov 8   ;;  %vm58_vm2 = vcmask 64512   ;;  %v171_v16 = vmov 1.0  }
   0x7   :  { %v35_v2 = vmul.f32 %v113_v1, %v30_v0  ;;  %v41_v5 = vand.u32 127, %v40_v4  ;;  %s172_s23 = smov [#allocation6]   ;;  %s94_s27 = sshll.u32 %s208_s3, 4  ;;  %vm85_vm3 = vcmask 57344   ;;  %s95_s27 = int_to_ptr.hbm [resolvable:$true] %s94_s27 }
   0x8   :  { %s92_s24 = sshll.u32 %s172_s23, 4  ;;  %s93_s24 = int_to_ptr.vmem [resolvable:$true] %s92_s24 }
   0x9   :  { %v37_v3 = vsel %vm36_vm0, %v35_v2, 0.0  ;;  %vm42_vm1 = vcmp.eq.s32.totalorder %v41_v5, 0 }
   0xa   :  { %38 = vadd.xlane.f32.xlu0 %v37_v3 }
  0x7d   :  { %v39_v6 = vpop.xlane.xlu0 %38 }
  0x7e   :  { %v43_v7 = vsel %vm42_vm1, %v39_v6, 0.0 }
  0x7f   :  { %44 = vrot.lane.b32.xlu0 %v43_v7, %s167_s0 }
  0xf1   :  { %v45_v8 = vpop.permute.xlu0 %44 }
  0xf2   :  { %v46_v9 = vadd.f32 %v45_v8, %v43_v7 }
  0xf4   :  { %47 = vrot.lane.b32.xlu1 %v46_v9, %s168_s19 }
 0x166   :  { %v48_v10 = vpop.permute.xlu1 %47 }
 0x167   :  { %v49_v11 = vadd.f32 %v48_v10, %v46_v9 }
 0x169   :  { %50 = vrot.lane.b32.xlu1 %v49_v11, %s169_s20 }
 0x1db   :  { %v51_v12 = vpop.permute.xlu1 %50 }
 0x1dc   :  { %v52_v13 = vadd.f32 %v51_v12, %v49_v11 }
 0x1de   :  { %53 = vrot.lane.b32.xlu2 %v52_v13, %s170_s1 }
 0x238   :  { %v54_v14 = vpop.permute.xlu2 %53 }
 0x239   :  { %v55_v15 = vadd.f32 %v54_v14, %v52_v13 }
 0x23b   :  { %104 = vmatpush.xpose.msk.msra.mxu0 %vm58_vm2, %v55_v15 }
 0x23e   :  { %105 = vmatmul.msk.f32.vlgmr.msra.gmra.mxu0 %vm58_vm2, %v171_v16 }
 0x2bb   :  { %v82_v18 = vpop.f32.mrf.mxu0 }
 0x2bc   :  { %v83_v19 = vadd.f32 %v82_v18, %v57_v17 }
 0x2be   :  { %86 = vst.msk [vmem:[#allocation6] sm:$0x1] %vm85_vm3, %v83_v19 }
 0x2bf   :  { %97 = dma.vmem_to_hbm [thread:$0]  %s93_s24, 16, %s95_s27, [#allocation5]  }
 0x2c0   :  { %164 = dma.done.wait [#allocation5], 16  }
 0x2c1   :  { %165 = vsyncadd [#allocation5], 4294967280 }
 0x2c2   :  { %102 = vsyncpa [#allocation4], 1 }
 0x2c3   :  { %103 = vsyncpa [#allocation5], 1 }

</bundles_post_ra>
